<compile_context>
chip_gen: v5e
topology: v5e:2x2
jax: 0.10.0
libtpu: 0.0.40
codegen_flags: <defaults>
</compile_context>

<pallas_src>
import jax
import jax.numpy as jnp
from jax import lax
from jax.experimental import pallas as pl
from jax.experimental.pallas import tpu as pltpu
import numpy as np


# ----------------------------------------------------------------------------
# Glue: distance fn, neighbor selection, gathers (matches the PyTorch helpers)
# ----------------------------------------------------------------------------
def dist_fn(keys, points):
    """keys (B,K,D), points (B,P,D) ->
       valid (B,K,P) bool, dist_vec (B,K,P,D), dist (B,K,P)."""
    B, K, D = keys.shape
    P = points.shape[1]
    dist_vec = points[:, None, :, :] - keys[:, :, None, :]        # (B,K,P,D)
    dist = jnp.sum(dist_vec * dist_vec, axis=-1)                  # (B,K,P)
    # Mark the last 10 points invalid so some selected neighbors get masked.
    valid = jnp.broadcast_to(jnp.arange(P)[None, None, :] < (P - 10), (B, K, P))
    return valid, dist_vec, dist


def closest_pts_to_keys(keys, points, neighbor_count):
    valid, dist_vec, dist = dist_fn(keys, points)
    assert dist_vec is not dist
    big_dist = dist.max() * 3000.0
    dist = dist + (~valid) * big_dist
    k_count = min(neighbor_count, dist.shape[2]) if neighbor_count != -1 else dist.shape[2]
    _, idxs = lax.top_k(-dist, k_count)                           # smallest distances
    return idxs, dist_vec, valid


def gather_neighbor_info(feats, n_idxs, rel_pos, valid):
    """feats (B,P,C), n_idxs (B,K,N), rel_pos (B,K,P,D), valid (B,K,P)."""
    B, K, N = n_idxs.shape
    neighbor_rel = jnp.take_along_axis(rel_pos, n_idxs[..., None], axis=2)      # (B,K,N,D)
    feats_exp = jnp.broadcast_to(feats[:, None], (B, K, feats.shape[1], feats.shape[2]))
    neighbor_feats = jnp.take_along_axis(feats_exp, n_idxs[..., None], axis=2)  # (B,K,N,C)
    neighbor_valid = jnp.take_along_axis(valid, n_idxs, axis=2)                 # (B,K,N)
    return neighbor_rel, neighbor_feats, neighbor_valid


# ----------------------------------------------------------------------------
# Pallas kernel: fused weight_conv MLP + masked contraction + final_conv MLP,
# operating on lane-packed groups of R keys.  No lane slicing, no concat.
# ----------------------------------------------------------------------------
def pointconv_kernel(x_ref, w1_ref, b1_ref, w2_ref, b2_ref, ex_ref,
                     v1_ref, c1_ref, v2_ref, c2_ref, out_ref):
    # x_ref:  (gt, N, R*(D+c_in))  fused bf16 stream: packed rel | packed masked feats
    # w1_ref: (R*(D+c_in), R*H1)   block-diag w1 on rel rows, zeros on feat rows
    # w2_ref: (R*H1, R*c_mid*c_in) block-diag w2 with c_in replication folded in
    # ex_ref: (R*(D+c_in), R*c_mid*c_in) 0/1 selection: feat lanes tiled over c_mid
    # v1_ref/v2_ref: block-diag final_conv weights; biases lane-tiled
    # out_ref: (gt, R*c_out) lane-dense (128-lane) output block
    x = x_ref[...]                                               # bf16

    # weight_conv layer 1 (acts only on rel lanes via zero rows in w1f)
    h = lax.dot_general(x, w1_ref[...], (((2,), (0,)), ((), ())),
                        preferred_element_type=jnp.float32)
    h = jnp.maximum(h + b1_ref[...], 0.0)                        # (gt, N, R*H1) f32

    # weight_conv layer 2, already expanded to (c_mid * c_in) lanes per key:
    # m_exp[., r*c_mid*c_in + j*c_in + c] = m[., r*c_mid + j]
    m_exp = lax.dot_general(h.astype(jnp.bfloat16), w2_ref[...],
                            (((2,), (0,)), ((), ())),
                            preferred_element_type=jnp.float32) + b2_ref[...]

    # Expand pre-masked neighbor feats 32 -> 256 lanes with one 0/1 matmul.
    nf_exp = lax.dot_general(x, ex_ref[...], (((2,), (0,)), ((), ())),
                             preferred_element_type=jnp.float32)

    # e = sum_n m * masked_nf, already in the row-major (c_mid, c_in) lane order
    e = jnp.sum(m_exp * nf_exp, axis=1)                          # (gt, R*c_mid*c_in)

    # final_conv MLP: two clean 2-D MXU matmuls; second lands on a lane-dense
    # (gt, R*c_out = 128) output block -> unmasked stores.
    h2 = jnp.dot(e.astype(jnp.bfloat16), v1_ref[...],
                 preferred_element_type=jnp.float32)
    h2 = jnp.maximum(h2 + c1_ref[...], 0.0)
    out = jnp.dot(h2.astype(jnp.bfloat16), v2_ref[...],
                  preferred_element_type=jnp.float32) + c2_ref[...]
    out_ref[...] = out.astype(out_ref.dtype)


# ----------------------------------------------------------------------------
# Wrapper: key packing, block-diagonal weights, tiling, pallas_call
# ----------------------------------------------------------------------------
def _block_diag(w, r):
    a, b = w.shape
    eye = jnp.eye(r, dtype=w.dtype)
    return (eye[:, None, :, None] * w[None, :, None, :]).reshape(r * a, r * b)


def _pack_keys(x, r):
    # (BK, N, C) -> (BK//r, N, r*C): key r of each group goes to lane block r.
    bk, n, c = x.shape
    return x.reshape(bk // r, r, n, c).transpose(0, 2, 1, 3).reshape(bk // r, n, r * c)


def _pick_group_tile(g, target):
    gt = min(target, g)
    if g >= 16:
        gt = min(gt, g // 2)            # >= 2 grid steps -> both v7x TCs busy
        gt = max(8, (gt // 8) * 8)      # output 2nd-minor dim multiple of 8
    return max(gt, 1)


def pointconv_pallas(neighbor_rel, neighbor_feats, neighbor_valid, params,
                     keys_per_step=4096):
    B, K, N, D = neighbor_rel.shape
    c_in = neighbor_feats.shape[-1]
    w1, b1, w2, b2, v1, c1, v2, c2 = params
    H1 = w1.shape[1]
    c_mid = w2.shape[1]
    H2 = c1.shape[1]
    c_out = c2.shape[1]

    R = 128 // c_out if 128 % c_out == 0 else 8      # keys packed per output row
    BK = B * K
    BKp = pl.cdiv(BK, R) * R                         # pad key count to multiple of R

    f32, bf16 = jnp.float32, jnp.bfloat16

    # ---- wrapper-side layout plumbing (done once in XLA) ----
    # Pre-mask features (mask is {0,1}: exact), flatten keys, pad, pack R keys
    # into lanes, and fuse rel + masked feats into ONE lane-dense bf16 stream.
    rel = neighbor_rel.reshape(BK, N, D).astype(f32)
    nfm = (neighbor_feats * neighbor_valid[..., None]).reshape(BK, N, c_in).astype(f32)
    if BKp != BK:
        rel = jnp.pad(rel, ((0, BKp - BK), (0, 0), (0, 0)))
        nfm = jnp.pad(nfm, ((0, BKp - BK), (0, 0), (0, 0)))
    G = BKp // R
    xg = jnp.concatenate([_pack_keys(rel, R), _pack_keys(nfm, R)], axis=-1).astype(bf16)
    CX = R * (D + c_in)

    # Block-diagonal / lane-tiled bf16 MXU weights.
    w1f = jnp.concatenate([_block_diag(w1.astype(f32), R),
                           jnp.zeros((R * c_in, R * H1), f32)], axis=0).astype(bf16)
    w2x = jnp.repeat(w2.astype(f32), c_in, axis=1)               # (H1, c_mid*c_in)
    w2b = _block_diag(w2x, R).astype(bf16)                        # (R*H1, R*c_mid*c_in)
    b2x = jnp.repeat(b2.astype(f32), c_in, axis=1)
    exk = jnp.tile(jnp.eye(c_in, dtype=f32), (1, c_mid))          # (c_in, c_mid*c_in)
    exf = jnp.concatenate([jnp.zeros((R * D, R * c_mid * c_in), f32),
                           _block_diag(exk, R)], axis=0).astype(bf16)
    v1b = _block_diag(v1.astype(f32), R).astype(bf16)
    v2b = _block_diag(v2.astype(f32), R).astype(bf16)
    b1t = jnp.tile(b1.astype(f32), (1, R)).astype(bf16)
    b2t = jnp.tile(b2x, (1, R)).astype(bf16)
    c1t = jnp.tile(c1.astype(f32), (1, R)).astype(bf16)
    c2t = jnp.tile(c2.astype(f32), (1, R)).astype(bf16)

    # Tiling: large tiles amortize per-step overhead; clamp so large G gets
    # >= 2 parallel grid steps; pad G to a tile multiple (predictable VMEM).
    gt = _pick_group_tile(G, max(1, keys_per_step // R))
    Gp = pl.cdiv(G, gt) * gt
    if Gp != G:
        xg = jnp.pad(xg, ((0, Gp - G), (0, 0), (0, 0)))

    full = lambda shape: pl.BlockSpec(shape, lambda i: (0,) * len(shape))

    out = pl.pallas_call(
        pointconv_kernel,
        out_shape=jax.ShapeDtypeStruct((Gp, R * c_out), jnp.float32),
        grid=(Gp // gt,),
        in_specs=[
            pl.BlockSpec((gt, N, CX), lambda i: (i, 0, 0)),
            full((CX, R * H1)), full((1, R * H1)),
            full((R * H1, R * c_mid * c_in)), full((1, R * c_mid * c_in)),
            full((CX, R * c_mid * c_in)),
            full((R * c_mid * c_in, R * H2)), full((1, R * H2)),
            full((R * H2, R * c_out)), full((1, R * c_out)),
        ],
        out_specs=pl.BlockSpec((gt, R * c_out), lambda i: (i, 0)),
        compiler_params=pltpu.CompilerParams(
            dimension_semantics=("parallel",),
            vmem_limit_bytes=48 * 1024 * 1024),
    )(xg, w1f, b1t, w2b, b2t, exf, v1b, c1t, v2b, c2t)

    # (Gp, R*c_out) row-major == (Gp*R, c_out) row-major; drop padded keys.
    return out.reshape(Gp * R, c_out)[:BK].reshape(B, K, c_out)


# ----------------------------------------------------------------------------
# Pure-JAX reference mirroring the PyTorch forward (for verification)
# ----------------------------------------------------------------------------
def pointconv_reference(neighbor_rel, neighbor_feats, neighbor_valid, params):
    w1, b1, w2, b2, v1, c1, v2, c2 = params
    h = jax.nn.relu(neighbor_rel @ w1 + b1)
    m = h @ w2 + b2                                            # (B,K,N,Cmid)
    vm = neighbor_valid[..., None].astype(jnp.float32)
    masked_m = m * vm
    masked_nf = neighbor_feats * vm
    e = jnp.einsum('bknm,bknc->bkmc', masked_m, masked_nf)     # (B,K,Cmid,Cin)
    e = e.reshape(e.shape[0], e.shape[1], -1)
    h2 = jax.nn.relu(e @ v1 + c1)
    return h2 @ v2 + c2


# ----------------------------------------------------------------------------
# Main
# ----------------------------------------------------------------------------
if __name__ == "__main__":
    # PointConv(neighbors=8, c_in=4, weight_hidden=[32], c_mid=8,
    #           final_hidden=[32], c_out=16, dim=3, attn_heads=0)
    B, K, P = 2, 8, 16
    dim, neighbors = 3, 8
    c_in, c_mid, c_out = 4, 8, 16
    H1, H2 = 32, 32   # weight_hidden / final_hidden

    key = jax.random.PRNGKey(0)
    ks = jax.random.split(key, 12)
    keys_pts = jax.random.normal(ks[0], (B, K, dim), jnp.float32)
    points = jax.random.normal(ks[1], (B, P, dim), jnp.float32)
    feats = jax.random.normal(ks[2], (B, P, c_in), jnp.float32)

    # Deterministic parameter init (SetTransform = pointwise MLP, ReLU between layers)
    w1 = 0.2 * jax.random.normal(ks[3], (dim, H1), jnp.float32)
    b1 = 0.1 * jax.random.normal(ks[4], (1, H1), jnp.float32)
    w2 = 0.2 * jax.random.normal(ks[5], (H1, c_mid), jnp.float32)
    b2 = 0.1 * jax.random.normal(ks[6], (1, c_mid), jnp.float32)
    v1 = 0.2 * jax.random.normal(ks[7], (c_in * c_mid, H2), jnp.float32)
    c1 = 0.1 * jax.random.normal(ks[8], (1, H2), jnp.float32)
    v2 = 0.2 * jax.random.normal(ks[9], (H2, c_out), jnp.float32)
    c2 = 0.1 * jax.random.normal(ks[10], (1, c_out), jnp.float32)
    params = (w1, b1, w2, b2, v1, c1, v2, c2)

    # Neighbor search + gathers (glue, matches calc_neighbor_info)
    n_idxs, rel_pos, valid = closest_pts_to_keys(keys_pts, points, neighbors)
    neighbor_rel, neighbor_feats, neighbor_valid = gather_neighbor_info(
        feats, n_idxs, rel_pos, valid)

    out = pointconv_pallas(neighbor_rel, neighbor_feats, neighbor_valid, params)
    out = jax.block_until_ready(out)

    # Reference sees the same bf16-rounded inputs and weights the kernel sees;
    # its intermediates stay f32, so tolerance covers the kernel's bf16 MXU
    # activation casts (h, e, h2).
    q = lambda a: a.astype(jnp.bfloat16).astype(jnp.float32)
    params_q = tuple(q(p) for p in params)
    ref = pointconv_reference(q(neighbor_rel), q(neighbor_feats),
                              neighbor_valid, params_q)
    np.testing.assert_allclose(np.asarray(out), np.asarray(ref), rtol=3e-2, atol=3e-2)
    print("KERNEL_OK")
</pallas_src>

<mosaic_0001>
module attributes {stable_mosaic.version = 11 : i64} {
  func.func @pointconv_kernel(%arg0: i32, %arg1: memref<2x8x56xbf16, #tpu.memory_space<vmem>>, %arg2: memref<56x256xbf16, #tpu.memory_space<vmem>>, %arg3: memref<1x256xbf16, #tpu.memory_space<vmem>>, %arg4: memref<256x256xbf16, #tpu.memory_space<vmem>>, %arg5: memref<1x256xbf16, #tpu.memory_space<vmem>>, %arg6: memref<56x256xbf16, #tpu.memory_space<vmem>>, %arg7: memref<256x256xbf16, #tpu.memory_space<vmem>>, %arg8: memref<1x256xbf16, #tpu.memory_space<vmem>>, %arg9: memref<256x128xbf16, #tpu.memory_space<vmem>>, %arg10: memref<1x128xbf16, #tpu.memory_space<vmem>>, %arg11: memref<2x128xf32, #tpu.memory_space<vmem>>) attributes {dimension_semantics = [#tpu.dimension_semantics<parallel>], iteration_bounds = array<i64: 1>, scalar_prefetch = 0 : i64, scratch_operands = 0 : i64, tpu.core_type = #tpu.core_type<tc>, window_params = [{transform_indices = @transform_0, window_bounds = array<i64: 2, 8, 56>}, {pipeline_mode = #tpu.pipeline_mode<synchronous>, transform_indices = @transform_1, window_bounds = array<i64: 56, 256>}, {pipeline_mode = #tpu.pipeline_mode<synchronous>, transform_indices = @transform_2, window_bounds = array<i64: 1, 256>}, {pipeline_mode = #tpu.pipeline_mode<synchronous>, transform_indices = @transform_3, window_bounds = array<i64: 256, 256>}, {pipeline_mode = #tpu.pipeline_mode<synchronous>, transform_indices = @transform_4, window_bounds = array<i64: 1, 256>}, {pipeline_mode = #tpu.pipeline_mode<synchronous>, transform_indices = @transform_5, window_bounds = array<i64: 56, 256>}, {pipeline_mode = #tpu.pipeline_mode<synchronous>, transform_indices = @transform_6, window_bounds = array<i64: 256, 256>}, {pipeline_mode = #tpu.pipeline_mode<synchronous>, transform_indices = @transform_7, window_bounds = array<i64: 1, 256>}, {pipeline_mode = #tpu.pipeline_mode<synchronous>, transform_indices = @transform_8, window_bounds = array<i64: 256, 128>}, {pipeline_mode = #tpu.pipeline_mode<synchronous>, transform_indices = @transform_9, window_bounds = array<i64: 1, 128>}, {transform_indices = @transform_10, window_bounds = array<i64: 2, 128>}]} {
    %c0 = arith.constant 0 : index
    %c0_0 = arith.constant 0 : index
    %c0_1 = arith.constant 0 : index
    %0 = vector.load %arg1[%c0, %c0_0, %c0_1] : memref<2x8x56xbf16, #tpu.memory_space<vmem>>, vector<2x8x56xbf16>
    %c0_2 = arith.constant 0 : index
    %c0_3 = arith.constant 0 : index
    %1 = vector.load %arg2[%c0_2, %c0_3] : memref<56x256xbf16, #tpu.memory_space<vmem>>, vector<56x256xbf16>
    %cst = arith.constant dense<0.000000e+00> : vector<2x8x256xf32>
    %2 = tpu.matmul %0, %1, %cst {dimension_numbers = #tpu.dot_dimension_numbers<[2], [0], [0, 1], [1], [0, 0, 0, 1, 1, 1], [], []>} : vector<2x8x56xbf16>, vector<56x256xbf16>, vector<2x8x256xf32> -> vector<2x8x256xf32>
    %c0_4 = arith.constant 0 : index
    %c0_5 = arith.constant 0 : index
    %3 = vector.load %arg3[%c0_4, %c0_5] : memref<1x256xbf16, #tpu.memory_space<vmem>>, vector<1x256xbf16>
    %4 = arith.extf %3 : vector<1x256xbf16> to vector<1x256xf32>
    %5 = vector.shape_cast %4 : vector<1x256xf32> to vector<1x1x256xf32>
    %6 = vector.broadcast %5 : vector<1x1x256xf32> to vector<2x8x256xf32>
    %7 = arith.addf %2, %6 : vector<2x8x256xf32>
    %cst_6 = arith.constant 0.000000e+00 : f32
    %8 = vector.broadcast %cst_6 : f32 to vector<2x8x256xf32>
    %9 = arith.maximumf %7, %8 : vector<2x8x256xf32>
    %10 = arith.truncf %9 : vector<2x8x256xf32> to vector<2x8x256xbf16>
    %c0_7 = arith.constant 0 : index
    %c0_8 = arith.constant 0 : index
    %11 = vector.load %arg4[%c0_7, %c0_8] : memref<256x256xbf16, #tpu.memory_space<vmem>>, vector<256x256xbf16>
    %cst_9 = arith.constant dense<0.000000e+00> : vector<2x8x256xf32>
    %12 = tpu.matmul %10, %11, %cst_9 {dimension_numbers = #tpu.dot_dimension_numbers<[2], [0], [0, 1], [1], [0, 0, 0, 1, 1, 1], [], []>} : vector<2x8x256xbf16>, vector<256x256xbf16>, vector<2x8x256xf32> -> vector<2x8x256xf32>
    %c0_10 = arith.constant 0 : index
    %c0_11 = arith.constant 0 : index
    %13 = vector.load %arg5[%c0_10, %c0_11] : memref<1x256xbf16, #tpu.memory_space<vmem>>, vector<1x256xbf16>
    %14 = arith.extf %13 : vector<1x256xbf16> to vector<1x256xf32>
    %15 = vector.shape_cast %14 : vector<1x256xf32> to vector<1x1x256xf32>
    %16 = vector.broadcast %15 : vector<1x1x256xf32> to vector<2x8x256xf32>
    %17 = arith.addf %12, %16 : vector<2x8x256xf32>
    %c0_12 = arith.constant 0 : index
    %c0_13 = arith.constant 0 : index
    %18 = vector.load %arg6[%c0_12, %c0_13] : memref<56x256xbf16, #tpu.memory_space<vmem>>, vector<56x256xbf16>
    %cst_14 = arith.constant dense<0.000000e+00> : vector<2x8x256xf32>
    %19 = tpu.matmul %0, %18, %cst_14 {dimension_numbers = #tpu.dot_dimension_numbers<[2], [0], [0, 1], [1], [0, 0, 0, 1, 1, 1], [], []>} : vector<2x8x56xbf16>, vector<56x256xbf16>, vector<2x8x256xf32> -> vector<2x8x256xf32>
    %20 = arith.mulf %17, %19 : vector<2x8x256xf32>
    %cst_15 = arith.constant dense<0.000000e+00> : vector<2x256xf32>
    %21 = vector.multi_reduction <add>, %20, %cst_15 [1] : vector<2x8x256xf32> to vector<2x256xf32>
    %22 = arith.truncf %21 : vector<2x256xf32> to vector<2x256xbf16>
    %c0_16 = arith.constant 0 : index
    %c0_17 = arith.constant 0 : index
    %23 = vector.load %arg7[%c0_16, %c0_17] : memref<256x256xbf16, #tpu.memory_space<vmem>>, vector<256x256xbf16>
    %cst_18 = arith.constant dense<0.000000e+00> : vector<2x256xf32>
    %24 = tpu.matmul %22, %23, %cst_18 {dimension_numbers = #tpu.dot_dimension_numbers<[1], [0], [0], [1], [0, 0, 1, 1], [], []>} : vector<2x256xbf16>, vector<256x256xbf16>, vector<2x256xf32> -> vector<2x256xf32>
    %c0_19 = arith.constant 0 : index
    %c0_20 = arith.constant 0 : index
    %25 = vector.load %arg8[%c0_19, %c0_20] : memref<1x256xbf16, #tpu.memory_space<vmem>>, vector<1x256xbf16>
    %26 = arith.extf %25 : vector<1x256xbf16> to vector<1x256xf32>
    %27 = vector.broadcast %26 : vector<1x256xf32> to vector<2x256xf32>
    %28 = arith.addf %24, %27 : vector<2x256xf32>
    %cst_21 = arith.constant 0.000000e+00 : f32
    %29 = vector.broadcast %cst_21 : f32 to vector<2x256xf32>
    %30 = arith.maximumf %28, %29 : vector<2x256xf32>
    %31 = arith.truncf %30 : vector<2x256xf32> to vector<2x256xbf16>
    %c0_22 = arith.constant 0 : index
    %c0_23 = arith.constant 0 : index
    %32 = vector.load %arg9[%c0_22, %c0_23] : memref<256x128xbf16, #tpu.memory_space<vmem>>, vector<256x128xbf16>
    %cst_24 = arith.constant dense<0.000000e+00> : vector<2x128xf32>
    %33 = tpu.matmul %31, %32, %cst_24 {dimension_numbers = #tpu.dot_dimension_numbers<[1], [0], [0], [1], [0, 0, 1, 1], [], []>} : vector<2x256xbf16>, vector<256x128xbf16>, vector<2x128xf32> -> vector<2x128xf32>
    %c0_25 = arith.constant 0 : index
    %c0_26 = arith.constant 0 : index
    %34 = vector.load %arg10[%c0_25, %c0_26] : memref<1x128xbf16, #tpu.memory_space<vmem>>, vector<1x128xbf16>
    %35 = arith.extf %34 : vector<1x128xbf16> to vector<1x128xf32>
    %36 = vector.broadcast %35 : vector<1x128xf32> to vector<2x128xf32>
    %37 = arith.addf %33, %36 : vector<2x128xf32>
    %c0_27 = arith.constant 0 : index
    %c0_28 = arith.constant 0 : index
    %38 = vector.load %arg11[%c0_27, %c0_28] : memref<2x128xf32, #tpu.memory_space<vmem>>, vector<2x128xf32>
    tpu.vector_store %arg11[%c0_27, %c0_28], %37 {strides = array<i32>} : memref<2x128xf32, #tpu.memory_space<vmem>>, vector<2x128xf32>,
    return
  }
  func.func @transform_0(%arg0: i32) -> (i32, i32, i32) {
    %c0_i32 = arith.constant 0 : i32
    %c0_i32_0 = arith.constant 0 : i32
    %c0_i32_1 = arith.constant 0 : i32
    return %arg0, %c0_i32, %c0_i32_0 : i32, i32, i32
  }
  func.func @transform_1(%arg0: i32) -> (i32, i32) {
    %c0_i32 = arith.constant 0 : i32
    %c0_i32_0 = arith.constant 0 : i32
    %c0_i32_1 = arith.constant 0 : i32
    return %c0_i32, %c0_i32_0 : i32, i32
  }
  func.func @transform_2(%arg0: i32) -> (i32, i32) {
    %c0_i32 = arith.constant 0 : i32
    %c0_i32_0 = arith.constant 0 : i32
    %c0_i32_1 = arith.constant 0 : i32
    return %c0_i32, %c0_i32_0 : i32, i32
  }
  func.func @transform_3(%arg0: i32) -> (i32, i32) {
    %c0_i32 = arith.constant 0 : i32
    %c0_i32_0 = arith.constant 0 : i32
    %c0_i32_1 = arith.constant 0 : i32
    return %c0_i32, %c0_i32_0 : i32, i32
  }
  func.func @transform_4(%arg0: i32) -> (i32, i32) {
    %c0_i32 = arith.constant 0 : i32
    %c0_i32_0 = arith.constant 0 : i32
    %c0_i32_1 = arith.constant 0 : i32
    return %c0_i32, %c0_i32_0 : i32, i32
  }
  func.func @transform_5(%arg0: i32) -> (i32, i32) {
    %c0_i32 = arith.constant 0 : i32
    %c0_i32_0 = arith.constant 0 : i32
    %c0_i32_1 = arith.constant 0 : i32
    return %c0_i32, %c0_i32_0 : i32, i32
  }
  func.func @transform_6(%arg0: i32) -> (i32, i32) {
    %c0_i32 = arith.constant 0 : i32
    %c0_i32_0 = arith.constant 0 : i32
    %c0_i32_1 = arith.constant 0 : i32
    return %c0_i32, %c0_i32_0 : i32, i32
  }
  func.func @transform_7(%arg0: i32) -> (i32, i32) {
    %c0_i32 = arith.constant 0 : i32
    %c0_i32_0 = arith.constant 0 : i32
    %c0_i32_1 = arith.constant 0 : i32
    return %c0_i32, %c0_i32_0 : i32, i32
  }
  func.func @transform_8(%arg0: i32) -> (i32, i32) {
    %c0_i32 = arith.constant 0 : i32
    %c0_i32_0 = arith.constant 0 : i32
    %c0_i32_1 = arith.constant 0 : i32
    return %c0_i32, %c0_i32_0 : i32, i32
  }
  func.func @transform_9(%arg0: i32) -> (i32, i32) {
    %c0_i32 = arith.constant 0 : i32
    %c0_i32_0 = arith.constant 0 : i32
    %c0_i32_1 = arith.constant 0 : i32
    return %c0_i32, %c0_i32_0 : i32, i32
  }
  func.func @transform_10(%arg0: i32) -> (i32, i32) {
    %c0_i32 = arith.constant 0 : i32
    %c0_i32_0 = arith.constant 0 : i32
    return %arg0, %c0_i32 : i32, i32
  }
}

</mosaic_0001>

<bundles_post_ra>
// kernel: tpu_custom_call.1
= control target key start
LH: loop header
LB: loop body
LE: loop exit
PB: predicated region body
PF: predicated region fallthrough
CT: control target
= control target key end

     0   :  { %15 = vsyncpa [#allocation3], 0  ;;  %s1890_s0 = inlined_call_operand.hbm [shape: bf16[2,8,56], index: 0, kind: input, shape index: {}]   ;;  %s1891_s1 = inlined_call_operand.hbm [shape: bf16[56,256], index: 1, kind: input, shape index: {}]   ;;  %s1892_s2 = inlined_call_operand.hbm [shape: bf16[1,256], index: 2, kind: input, shape index: {}]   ;;  %s1893_s3 = inlined_call_operand.hbm [shape: bf16[256,256], index: 3, kind: input, shape index: {}]   ;;  %s1894_s4 = inlined_call_operand.vmem [shape: bf16[1,256], index: 4, kind: input, shape index: {}]   ;;  %s1895_s5 = inlined_call_operand.hbm [shape: bf16[56,256], index: 5, kind: input, shape index: {}]   ;;  %s1896_s6 = inlined_call_operand.hbm [shape: bf16[256,256], index: 6, kind: input, shape index: {}]   ;;  %s1897_s7 = inlined_call_operand.vmem [shape: bf16[1,256], index: 7, kind: input, shape index: {}]   ;;  %s1898_s8 = inlined_call_operand.hbm [shape: bf16[256,128], index: 8, kind: input, shape index: {}]   ;;  %s1899_s9 = inlined_call_operand.vmem [shape: bf16[1,128], index: 9, kind: input, shape index: {}]   ;;  %s1900_s10 = inlined_call_operand.hbm [shape: f32[2,128], index: 10, kind: output, shape index: {}]  }
   0x1   :  { %16 = vsyncpa [#allocation6], 0 }
   0x2   :  { %17 = vsyncpa [#allocation9], 0 }
   0x3   :  { %18 = vsyncpa [#allocation12], 0  ;;  %s37_s15 = sshll.u32 %s1891_s1, 4  ;;  %s38_s15 = int_to_ptr.hbm [resolvable:$true] %s37_s15 }
   0x4   :  { %19 = vsyncpa [#allocation4], 0  ;;  %s1755_s16 = smov [#allocation5]   ;;  %s61_s20 = sshll.u32 %s1893_s3, 4  ;;  %s62_s20 = int_to_ptr.hbm [resolvable:$true] %s61_s20 }
   0x5   :  { %s39_s17 = sshll.u32 %s1755_s16, 4  ;;  %s1756_s21 = smov 128   ;;  %s40_s17 = int_to_ptr.vmem [resolvable:$true] %s39_s17 }
   0x6   :  { %s1757_s22 = smov 8   ;;  %s1758_s23 = smov [#allocation8]  }
   0x7   :  { %45 = dma.hbm_to_vmem [thread:$0]  %s38_s15, 896, %s40_s17, [#allocation6], %s1756_s21, %s1756_s21, %s1757_s22  }
   0x8   :  { %s63_s24 = sshll.u32 %s1758_s23, 4  ;;  %s89_s26 = sshll.u32 %s1896_s6, 4  ;;  %s64_s24 = int_to_ptr.vmem [resolvable:$true] %s63_s24  ;;  %s90_s26 = int_to_ptr.hbm [resolvable:$true] %s89_s26 }
   0x9   :  { %69 = dma.hbm_to_vmem [thread:$0]  %s62_s20, 4096, %s64_s24, [#allocation9], %s1756_s21, %s1756_s21, %s1757_s22  }
   0xa   :  { %s24_s28 = sshll.u32 %s1890_s0, 4  ;;  %s1759_s29 = smov [#allocation11]   ;;  %s25_s28 = int_to_ptr.hbm [resolvable:$true] %s24_s28 }
   0xb   :  { %s91_s30 = sshll.u32 %s1759_s29, 4  ;;  %s1760_s11 = smov [#allocation2]   ;;  %s92_s30 = int_to_ptr.vmem [resolvable:$true] %s91_s30 }
   0xc   :  { %97 = dma.hbm_to_vmem [thread:$0]  %s90_s26, 4096, %s92_s30, [#allocation12], %s1756_s21, %s1756_s21, %s1757_s22  }
   0xd   :  { %s26_s6 = sshll.u32 %s1760_s11, 4  ;;  %s1761_s12 = smov 64   ;;  %s27_s6 = int_to_ptr.vmem [resolvable:$true] %s26_s6 }
   0xe   :  { %s1762_s13 = smov 4   ;;  %s51_s16 = sshll.u32 %s1892_s2, 4  ;;  %s52_s16 = int_to_ptr.hbm [resolvable:$true] %s51_s16 }
   0xf   :  { %32 = dma.hbm_to_vmem [thread:$0]  %s25_s28, 128, %s27_s6, [#allocation3], %s1761_s12, %s1761_s12, %s1762_s13  }
  0x10   :  { %s1763_s0 = smov [#allocation7]   ;;  %s76_s20 = sshll.u32 %s1895_s5, 4  ;;  %s77_s20 = int_to_ptr.hbm [resolvable:$true] %s76_s20 }
  0x11   :  { %s53_s17 = sshll.u32 %s1763_s0, 4  ;;  %s1764_s23 = smov [#allocation10]   ;;  %s54_s17 = int_to_ptr.vmem [resolvable:$true] %s53_s17 }
  0x12   :  { %56 = dma.hbm_to_vmem [thread:$0]  %s52_s16, 32, %s54_s17, [#allocation6]  }
  0x13   :  { %s78_s24 = sshll.u32 %s1764_s23, 4  ;;  %s104_s26 = sshll.u32 %s1898_s8, 4  ;;  %s79_s24 = int_to_ptr.vmem [resolvable:$true] %s78_s24  ;;  %s105_s26 = int_to_ptr.hbm [resolvable:$true] %s104_s26 }
  0x14   :  { %84 = dma.hbm_to_vmem [thread:$0]  %s77_s20, 896, %s79_s24, [#allocation9], %s1756_s21, %s1756_s21, %s1757_s22  }
  0x15   :  { %s1765_s2 = smov [#allocation13]  }
  0x16   :  { %s106_s3 = sshll.u32 %s1765_s2, 4  ;;  %s107_s3 = int_to_ptr.vmem [resolvable:$true] %s106_s3 }
  0x17   :  { %112 = dma.hbm_to_vmem [thread:$0]  %s105_s26, 2048, %s107_s3, [#allocation12], %s1761_s12, %s1761_s12, %s1762_s13  }
  0x18   :  { %1745 = dma.done.wait [#allocation3], 128  }
  0x19   :  { %1746 = vsyncadd [#allocation3], 4294967168 }
  0x1a   :  { %1747 = dma.done.wait [#allocation6], 928  }
  0x1b   :  { %1748 = vsyncadd [#allocation6], 4294966368 }
  0x1c   :  { %1749 = dma.done.wait [#allocation9], 4992  }
  0x1d   :  { %1750 = vsyncadd [#allocation9], 4294962304 }
  0x1e   :  { %1751 = dma.done.wait [#allocation12], 6144  }
  0x1f   :  { %1752 = vsyncadd [#allocation12], 4294961152  ;;  %v152_v0 = vld [vmem:[#allocation5 + $0x30] sm:$0xff]  ;;  %vm206_vm0 = vcmask 1043456   ;;  %v1094_v3 = vld [vmem:[#allocation5 + $0x20] sm:$0xf] }
  0x20   :  { %v186_v1 = vunpack.c.l.b16 %v152_v0  ;;  %v187_v2 = vunpack.c.h.b16 %v152_v0  ;;  %v1454_v6 = vld [vmem:[#allocation5 + $0x24] sm:$0xf0]  ;;  %v1453_v7 = vld [vmem:[#allocation5 + $0x24] sm:$0xf]  ;;  %v1096_v8 = vld [vmem:[#allocation5 + $0x28] sm:$0xf0] }
  0x21   :  { %v1086_v11 = vld [vmem:[#allocation5 + $0x10] sm:$0xf]  ;;  %v1452_v12 = vld [vmem:[#allocation5 + $0x14] sm:$0xf0]  ;;  %v1095_v13 = vor.u32 %v1454_v6, %v1094_v3  ;;  %v1099_v14 = vor.u32 %v1453_v7, %v1096_v8  ;;  %v1451_v15 = vld [vmem:[#allocation5 + $0x14] sm:$0xf] }
  0x22   :  { %v194_v4 = vpack.c.b16 %v186_v1, %v186_v1  ;;  %v195_v5 = vpack.c.b16 %v187_v2, %v187_v2  ;;  %v1469_v16 = vld [vmem:[#allocation8 + $0x74] sm:$0xf]  ;;  %v1162_v17 = vld [vmem:[#allocation8 + $0x78] sm:$0xf0]  ;;  %v1088_v18 = vld [vmem:[#allocation5 + $0x18] sm:$0xf0]  ;;  %v1087_v28 = vor.u32 %v1452_v12, %v1086_v11 }
  0x23   :  { %v1165_v19 = vor.u32 %v1469_v16, %v1162_v17  ;;  %v1485_v20 = vld [vmem:[#allocation8 + $0xf4] sm:$0xf]  ;;  %v1226_v21 = vld [vmem:[#allocation8 + $0xf8] sm:$0xf0]  ;;  %v1078_v23 = vld [vmem:[#allocation5] sm:$0xf]  ;;  %v1091_v29 = vor.u32 %v1451_v15, %v1088_v18 }
  0x24   :  { %v208_v9 = vsel %vm206_vm0, %v194_v4, 0  ;;  %v211_v10 = vsel %vm206_vm0, %v195_v5, 0  ;;  %v1229_v22 = vor.u32 %v1485_v20, %v1226_v21  ;;  %v1450_v24 = vld [vmem:[#allocation5 + $0x4] sm:$0xf0]  ;;  %v1467_v25 = vld [vmem:[#allocation8 + $0x64] sm:$0xf] }
  0x25   :  { %217 = vmatpush.bf16.msra.mxu2 %v208_v9  ;;  %231 = vmatpush.bf16.msra.mxu3 %v211_v10  ;;  %v1154_v26 = vld [vmem:[#allocation8 + $0x68] sm:$0xf0]  ;;  %v1483_v27 = vld [vmem:[#allocation8 + $0xe4] sm:$0xf]  ;;  %v1080_v31 = vld [vmem:[#allocation5 + $0x8] sm:$0xf0]  ;;  %v1079_v44 = vor.u32 %v1450_v24, %v1078_v23 }
  0x26   :  { %486 = vmatpush.bf16.msra.mxu0 %v1165_v19  ;;  %v1449_v30 = vld [vmem:[#allocation5 + $0x4] sm:$0xf]  ;;  %v1157_v32 = vor.u32 %v1467_v25, %v1154_v26  ;;  %v1160_v34 = vld [vmem:[#allocation8 + $0x70] sm:$0xf]  ;;  %v1470_v35 = vld [vmem:[#allocation8 + $0x74] sm:$0xf0]  ;;  %500 = vmatpush.bf16.msra.mxu1 %v1229_v22 }
  0x27   :  { %v1218_v33 = vld [vmem:[#allocation8 + $0xe8] sm:$0xf0]  ;;  %v1465_v37 = vld [vmem:[#allocation8 + $0x54] sm:$0xf]  ;;  %v1224_v38 = vld [vmem:[#allocation8 + $0xf0] sm:$0xf]  ;;  %v1083_v45 = vor.u32 %v1449_v30, %v1080_v31  ;;  %v1161_v46 = vor.u32 %v1470_v35, %v1160_v34 }
  0x28   :  { %v1221_v36 = vor.u32 %v1483_v27, %v1218_v33  ;;  %v1486_v39 = vld [vmem:[#allocation8 + $0xf4] sm:$0xf0]  ;;  %v1146_v40 = vld [vmem:[#allocation8 + $0x58] sm:$0xf0]  ;;  %v1481_v42 = vld [vmem:[#allocation8 + $0xd4] sm:$0xf] }
  0x29   :  { %218 = vmatpush.bf16.msra.mxu2 %v1095_v13  ;;  %232 = vmatpush.bf16.msra.mxu3 %v1099_v14  ;;  %v1149_v41 = vor.u32 %v1465_v37, %v1146_v40  ;;  %v1210_v43 = vld [vmem:[#allocation8 + $0xd8] sm:$0xf0]  ;;  %v1225_v47 = vor.u32 %v1486_v39, %v1224_v38  ;;  %v1152_v48 = vld [vmem:[#allocation8 + $0x60] sm:$0xf]  ;;  %v1468_v49 = vld [vmem:[#allocation8 + $0x64] sm:$0xf0] }
  0x2a   :  { %487 = vmatpush.bf16.msra.mxu0 %v1157_v32  ;;  %501 = vmatpush.bf16.msra.mxu1 %v1221_v36  ;;  %v1216_v50 = vld [vmem:[#allocation8 + $0xe0] sm:$0xf]  ;;  %v1484_v51 = vld [vmem:[#allocation8 + $0xe4] sm:$0xf0]  ;;  %v1213_v52 = vor.u32 %v1481_v42, %v1210_v43  ;;  %vm202_vm1 = vcmask 457728   ;;  %v1153_v54 = vor.u32 %v1468_v49, %v1152_v48  ;;  %vm671_vm2 = vcmask 1041409  }
  0x2b   :  { %v1857_v53 = vld [vmem:[#allocation2] sm:$0xff]  ;;  %v1217_v55 = vor.u32 %v1484_v51, %v1216_v50  ;;  %v1144_v56 = vld [vmem:[#allocation8 + $0x50] sm:$0xf]  ;;  %v1466_v57 = vld [vmem:[#allocation8 + $0x54] sm:$0xf0]  ;;  %s1766_s27 = smov [#allocation14]  }
  0x2c   :  { %v1208_v58 = vld [vmem:[#allocation8 + $0xd0] sm:$0xf]  ;;  %v1482_v59 = vld [vmem:[#allocation8 + $0xd4] sm:$0xf0]  ;;  %v1145_v60 = vor.u32 %v1466_v57, %v1144_v56  ;;  %v1136_v62 = vld [vmem:[#allocation8 + $0x40] sm:$0xf] }
  0x2d   :  { %219 = vmatpush.bf16.msra.mxu2 %v1087_v28  ;;  %233 = vmatpush.bf16.msra.mxu3 %v1091_v29  ;;  %v1209_v61 = vor.u32 %v1482_v59, %v1208_v58  ;;  %v1464_v63 = vld [vmem:[#allocation8 + $0x44] sm:$0xf0]  ;;  %v1200_v1 = vld [vmem:[#allocation8 + $0xc0] sm:$0xf]  ;;  %v1463_v3 = vld [vmem:[#allocation8 + $0x44] sm:$0xf] }
  0x2e   :  { %488 = vmatpush.bf16.msra.mxu0 %v1149_v41  ;;  %502 = vmatpush.bf16.msra.mxu1 %v1213_v52  ;;  %v1137_v0 = vor.u32 %v1464_v63, %v1136_v62  ;;  %v1480_v2 = vld [vmem:[#allocation8 + $0xc4] sm:$0xf0]  ;;  %v1138_v5 = vld [vmem:[#allocation8 + $0x48] sm:$0xf0]  ;;  %v1479_v6 = vld [vmem:[#allocation8 + $0xc4] sm:$0xf] }
  0x2f   :  { %v1201_v4 = vor.u32 %v1480_v2, %v1200_v1  ;;  %v1141_v7 = vor.u32 %v1463_v3, %v1138_v5  ;;  %v1202_v8 = vld [vmem:[#allocation8 + $0xc8] sm:$0xf0]  ;;  %v1128_v10 = vld [vmem:[#allocation8 + $0x30] sm:$0xf]  ;;  %v1462_v11 = vld [vmem:[#allocation8 + $0x34] sm:$0xf0] }
  0x30   :  { %v1205_v9 = vor.u32 %v1479_v6, %v1202_v8  ;;  %v1192_v12 = vld [vmem:[#allocation8 + $0xb0] sm:$0xf]  ;;  %v1129_v13 = vor.u32 %v1462_v11, %v1128_v10  ;;  %v1478_v14 = vld [vmem:[#allocation8 + $0xb4] sm:$0xf0]  ;;  %v1461_v15 = vld [vmem:[#allocation8 + $0x34] sm:$0xf] }
  0x31   :  { %220 = vmatpush.bf16.msra.mxu2 %v1079_v44  ;;  %234 = vmatpush.bf16.msra.mxu3 %v1083_v45  ;;  %v1130_v16 = vld [vmem:[#allocation8 + $0x38] sm:$0xf0]  ;;  %v1193_v17 = vor.u32 %v1478_v14, %v1192_v12  ;;  %v1477_v19 = vld [vmem:[#allocation8 + $0xb4] sm:$0xf]  ;;  %v1120_v22 = vld [vmem:[#allocation8 + $0x20] sm:$0xf] }
  0x32   :  { %489 = vmatpush.bf16.msra.mxu0 %v1141_v7  ;;  %503 = vmatpush.bf16.msra.mxu1 %v1205_v9  ;;  %v1133_v18 = vor.u32 %v1461_v15, %v1130_v16  ;;  %v1194_v20 = vld [vmem:[#allocation8 + $0xb8] sm:$0xf0]  ;;  %v1460_v23 = vld [vmem:[#allocation8 + $0x24] sm:$0xf0]  ;;  %v1184_v24 = vld [vmem:[#allocation8 + $0xa0] sm:$0xf] }
  0x33   :  { %v1197_v21 = vor.u32 %v1477_v19, %v1194_v20  ;;  %v1121_v25 = vor.u32 %v1460_v23, %v1120_v22  ;;  %v1476_v26 = vld [vmem:[#allocation8 + $0xa4] sm:$0xf0]  ;;  %v1459_v27 = vld [vmem:[#allocation8 + $0x24] sm:$0xf]  ;;  %v1122_v28 = vld [vmem:[#allocation8 + $0x28] sm:$0xf0] }
  0x34   :  { %1100 = vmatmul.msk.bf16.vlgmr.msra.gmra.mxu2 %vm202_vm1, %v1857_v53  ;;  %1101 = vmatmul.msk.bf16.vlgmr.msra.gmra.mxu3 %vm202_vm1, %v1857_v53  ;;  %v1185_v29 = vor.u32 %v1476_v26, %v1184_v24  ;;  %v1125_v30 = vor.u32 %v1459_v27, %v1122_v28  ;;  %v1475_v31 = vld [vmem:[#allocation8 + $0xa4] sm:$0xf]  ;;  %v1186_v32 = vld [vmem:[#allocation8 + $0xa8] sm:$0xf0]  ;;  %v1112_v34 = vld [vmem:[#allocation8 + $0x10] sm:$0xf] }
  0x35   :  { %458 = vmatpush.bf16.msrb.mxu2 %v1161_v46  ;;  %472 = vmatpush.bf16.msrb.mxu3 %v1225_v47  ;;  %v1189_v33 = vor.u32 %v1475_v31, %v1186_v32  ;;  %v1458_v35 = vld [vmem:[#allocation8 + $0x14] sm:$0xf0]  ;;  %v1176_v36 = vld [vmem:[#allocation8 + $0x90] sm:$0xf]  ;;  %v1457_v39 = vld [vmem:[#allocation8 + $0x14] sm:$0xf] }
  0x36   :  { %490 = vmatpush.bf16.msra.mxu0 %v1133_v18  ;;  %504 = vmatpush.bf16.msra.mxu1 %v1197_v21  ;;  %v1113_v37 = vor.u32 %v1458_v35, %v1112_v34  ;;  %v1474_v38 = vld [vmem:[#allocation8 + $0x94] sm:$0xf0]  ;;  %v1114_v40 = vld [vmem:[#allocation8 + $0x18] sm:$0xf0]  ;;  %v1473_v43 = vld [vmem:[#allocation8 + $0x94] sm:$0xf] }
  0x37   :  { %v1177_v41 = vor.u32 %v1474_v38, %v1176_v36  ;;  %v1117_v42 = vor.u32 %v1457_v39, %v1114_v40  ;;  %v1178_v44 = vld [vmem:[#allocation8 + $0x98] sm:$0xf0]  ;;  %v1104_v46 = vld [vmem:[#allocation8] sm:$0xf]  ;;  %v1456_v47 = vld [vmem:[#allocation8 + $0x4] sm:$0xf0] }
  0x38   :  { %v1181_v45 = vor.u32 %v1473_v43, %v1178_v44  ;;  %v1168_v48 = vld [vmem:[#allocation8 + $0x80] sm:$0xf]  ;;  %v1105_v49 = vor.u32 %v1456_v47, %v1104_v46  ;;  %v1472_v50 = vld [vmem:[#allocation8 + $0x84] sm:$0xf0]  ;;  %v1455_v51 = vld [vmem:[#allocation8 + $0x4] sm:$0xf] }
  0x39   :  { %459 = vmatpush.bf16.msrb.mxu2 %v1153_v54  ;;  %473 = vmatpush.bf16.msrb.mxu3 %v1217_v55  ;;  %v1106_v52 = vld [vmem:[#allocation8 + $0x8] sm:$0xf0]  ;;  %v1169_v54 = vor.u32 %v1472_v50, %v1168_v48  ;;  %v1471_v56 = vld [vmem:[#allocation8 + $0x84] sm:$0xf]  ;;  %v520_v58 = vld [vmem:[#allocation10 + $0x30] sm:$0xff]  ;;  %s1057_s28 = sshll.u32 %s1766_s27, 4  ;;  %s1058_s28 = int_to_ptr.vmem [resolvable:$true] %s1057_s28 }
  0x3a   :  { %491 = vmatpush.bf16.msra.mxu0 %v1125_v30  ;;  %505 = vmatpush.bf16.msra.mxu1 %v1189_v33  ;;  %v1109_v55 = vor.u32 %v1455_v51, %v1106_v52  ;;  %v1170_v57 = vld [vmem:[#allocation8 + $0x88] sm:$0xf0]  ;;  %v1248_v3 = vld [vmem:[#allocation10 + $0x20] sm:$0xf]  ;;  %v1491_v6 = vld [vmem:[#allocation10 + $0x24] sm:$0xf] }
  0x3b   :  { %v1173_v59 = vor.u32 %v1471_v56, %v1170_v57  ;;  %v1250_v7 = vld [vmem:[#allocation10 + $0x28] sm:$0xf0]  ;;  %v1240_v8 = vld [vmem:[#allocation10 + $0x10] sm:$0xf]  ;;  %v1490_v10 = vld [vmem:[#allocation10 + $0x14] sm:$0xf0] }
  0x3c   :  { %v1253_v9 = vor.u32 %v1491_v6, %v1250_v7  ;;  %v1489_v11 = vld [vmem:[#allocation10 + $0x14] sm:$0xf]  ;;  %v1242_v12 = vld [vmem:[#allocation10 + $0x18] sm:$0xf0]  ;;  %v1241_v14 = vor.u32 %v1490_v10, %v1240_v8  ;;  %v1232_v16 = vld [vmem:[#allocation10] sm:$0xf] }
  0x3d   :  { %460 = vmatpush.bf16.msrb.mxu2 %v1145_v60  ;;  %474 = vmatpush.bf16.msrb.mxu3 %v1209_v61  ;;  %v540_v60 = vunpack.c.l.b16 %v520_v58  ;;  %v541_v61 = vunpack.c.h.b16 %v520_v58  ;;  %v1245_v15 = vor.u32 %v1489_v11, %v1242_v12  ;;  %v1487_v18 = vld [vmem:[#allocation10 + $0x4] sm:$0xf]  ;;  %v1234_v19 = vld [vmem:[#allocation10 + $0x8] sm:$0xf0]  ;;  %v1314_v46 = vld [vmem:[#allocation11 + $0x70] sm:$0xf] }
  0x3e   :  { %492 = vmatpush.bf16.msra.mxu0 %v1117_v42  ;;  %506 = vmatpush.bf16.msra.mxu1 %v1181_v45  ;;  %v1237_v23 = vor.u32 %v1487_v18, %v1234_v19  ;;  %v1508_v47 = vld [vmem:[#allocation11 + $0x74] sm:$0xf0]  ;;  %v1378_v48 = vld [vmem:[#allocation11 + $0xf0] sm:$0xf]  ;;  %v1507_v51 = vld [vmem:[#allocation11 + $0x74] sm:$0xf] }
  0x3f   :  { %v548_v62 = vpack.c.b16 %v540_v60, %v540_v60  ;;  %v549_v63 = vpack.c.b16 %v541_v61, %v541_v61  ;;  %v1524_v50 = vld [vmem:[#allocation11 + $0xf4] sm:$0xf0]  ;;  %v1316_v52 = vld [vmem:[#allocation11 + $0x78] sm:$0xf0]  ;;  %v1523_v56 = vld [vmem:[#allocation11 + $0xf4] sm:$0xf] }
  0x40   :  { %v1380_v57 = vld [vmem:[#allocation11 + $0xf8] sm:$0xf0]  ;;  %v1506_v60 = vld [vmem:[#allocation11 + $0x64] sm:$0xf0]  ;;  %v1370_v61 = vld [vmem:[#allocation11 + $0xe0] sm:$0xf] }
  0x41   :  { %461 = vmatpush.bf16.msrb.mxu2 %v1137_v0  ;;  %475 = vmatpush.bf16.msrb.mxu3 %v1201_v4  ;;  %v153_v0 = vld [vmem:[#allocation7] sm:$0x3]  ;;  %v557_v1 = vsel %vm206_vm0, %v548_v62, 0  ;;  %v560_v2 = vsel %vm206_vm0, %v549_v63, 0  ;;  %v1492_v4 = vld [vmem:[#allocation10 + $0x24] sm:$0xf0]  ;;  %v1383_v58 = vor.u32 %v1523_v56, %v1380_v57 }
  0x42   :  { %493 = vmatpush.bf16.msra.mxu0 %v1109_v55  ;;  %507 = vmatpush.bf16.msra.mxu1 %v1173_v59  ;;  %v1249_v5 = vor.u32 %v1492_v4, %v1248_v3  ;;  %v1319_v55 = vor.u32 %v1507_v51, %v1316_v52  ;;  %v1306_v59 = vld [vmem:[#allocation11 + $0x60] sm:$0xf]  ;;  %v1522_v62 = vld [vmem:[#allocation11 + $0xe4] sm:$0xf0]  ;;  %v1505_v63 = vld [vmem:[#allocation11 + $0x64] sm:$0xf] }
  0x43   :  { %v1521_v3 = vld [vmem:[#allocation11 + $0xe4] sm:$0xf]  ;;  %v1372_v4 = vld [vmem:[#allocation11 + $0xe8] sm:$0xf0]  ;;  %v1298_v6 = vld [vmem:[#allocation11 + $0x50] sm:$0xf] }
  0x44   :  { %v1504_v7 = vld [vmem:[#allocation11 + $0x54] sm:$0xf0]  ;;  %v1362_v8 = vld [vmem:[#allocation11 + $0xd0] sm:$0xf]  ;;  %v1503_v11 = vld [vmem:[#allocation11 + $0x54] sm:$0xf] }
  0x45   :  { %462 = vmatpush.bf16.msrb.mxu2 %v1129_v13  ;;  %476 = vmatpush.bf16.msrb.mxu3 %v1193_v17  ;;  %v154_v13 = vunpack.c.l.bf16 %v153_v0  ;;  %v1488_v17 = vld [vmem:[#allocation10 + $0x4] sm:$0xf0]  ;;  %v1308_v0 = vld [vmem:[#allocation11 + $0x68] sm:$0xf0]  ;;  %v1520_v10 = vld [vmem:[#allocation11 + $0xd4] sm:$0xf0] }
  0x46   :  { %v1233_v22 = vor.u32 %v1488_v17, %v1232_v16  ;;  %v1300_v12 = vld [vmem:[#allocation11 + $0x58] sm:$0xf0]  ;;  %v1290_v18 = vld [vmem:[#allocation11 + $0x40] sm:$0xf]  ;;  %v1502_v19 = vld [vmem:[#allocation11 + $0x44] sm:$0xf0] }
  0x47   :  { %v156_v20 = vperm.slane %v154_v13, 0  ;;  %v157_v21 = vperm.slane %v154_v13, 2  ;;  %v1363_v13 = vor.u32 %v1520_v10, %v1362_v8  ;;  %v1364_v16 = vld [vmem:[#allocation11 + $0xd8] sm:$0xf0]  ;;  %v1497_v51 = vld [vmem:[#allocation11 + $0x24] sm:$0xf] }
  0x48   :  { %v1276_v52 = vld [vmem:[#allocation11 + $0x28] sm:$0xf0]  ;;  %v1511_v8 = vld [vmem:[#allocation11 + $0x94] sm:$0xf]  ;;  %s1059_s11 = sshll.u32 %s1900_s10, 4  ;;  %s1060_s11 = int_to_ptr.hbm [resolvable:$true] %s1059_s11 }
  0x49   :  { %463 = vmatpush.bf16.msrb.mxu2 %v1121_v25  ;;  %477 = vmatpush.bf16.msrb.mxu3 %v1185_v29  ;;  %v160_v24 = vperm.slane %v156_v20, 0  ;;  %v161_v25 = vperm.slane %v157_v21, 0  ;;  %v1354_v20 = vld [vmem:[#allocation11 + $0xc0] sm:$0xf]  ;;  %v1291_v21 = vor.u32 %v1502_v19, %v1290_v18  ;;  %v1279_v57 = vor.u32 %v1497_v51, %v1276_v52  ;;  %v1493_v18 = vld [vmem:[#allocation11 + $0x4] sm:$0xf] }
  0x4a   :  { %v1260_v19 = vld [vmem:[#allocation11 + $0x8] sm:$0xf0] }
  0x4d   :  { %464 = vmatpush.bf16.msrb.mxu2 %v1113_v37  ;;  %478 = vmatpush.bf16.msrb.mxu3 %v1177_v41 }
  0x51   :  { %465 = vmatpush.bf16.msrb.mxu2 %v1105_v49  ;;  %479 = vmatpush.bf16.msrb.mxu3 %v1169_v54  ;;  %v1315_v49 = vor.u32 %v1508_v47, %v1314_v46  ;;  %v1379_v54 = vor.u32 %v1524_v50, %v1378_v48  ;;  %v1274_v46 = vld [vmem:[#allocation11 + $0x20] sm:$0xf]  ;;  %v1498_v47 = vld [vmem:[#allocation11 + $0x24] sm:$0xf0] }
  0x52   :  { %v1338_v48 = vld [vmem:[#allocation11 + $0xa0] sm:$0xf]  ;;  %v1514_v50 = vld [vmem:[#allocation11 + $0xa4] sm:$0xf0] }
  0x53   :  { %838 = vmatpush.bf16.msrb.mxu0 %v1315_v49  ;;  %851 = vmatpush.bf16.msrb.mxu1 %v1379_v54  ;;  %v1275_v49 = vor.u32 %v1498_v47, %v1274_v46  ;;  %v1339_v56 = vor.u32 %v1514_v50, %v1338_v48  ;;  %v1530_v46 = vld [vmem:[#allocation13 + $0x28] sm:$0xff] }
  0x54   :  { %v1538_v47 = vld [vmem:[#allocation13 + $0x68] sm:$0xff] }
  0x55   :  { %566 = vmatpush.bf16.msra.mxu2 %v557_v1  ;;  %580 = vmatpush.bf16.msra.mxu3 %v560_v2  ;;  %v1371_v1 = vor.u32 %v1522_v62, %v1370_v61  ;;  %v1311_v2 = vor.u32 %v1505_v63, %v1308_v0  ;;  %v1496_v62 = vld [vmem:[#allocation11 + $0x14] sm:$0xf0]  ;;  %v1330_v63 = vld [vmem:[#allocation11 + $0x90] sm:$0xf] }
  0x57   :  { %852 = vmatpush.bf16.msrb.mxu1 %v1371_v1  ;;  %v1512_v1 = vld [vmem:[#allocation11 + $0x94] sm:$0xf0] }
  0x59   :  { %567 = vmatpush.bf16.msra.mxu2 %v1249_v5  ;;  %581 = vmatpush.bf16.msra.mxu3 %v1253_v9  ;;  %v1375_v5 = vor.u32 %v1521_v3, %v1372_v4  ;;  %v1299_v9 = vor.u32 %v1504_v7, %v1298_v6  ;;  %v1268_v3 = vld [vmem:[#allocation11 + $0x18] sm:$0xf0]  ;;  %v1331_v6 = vor.u32 %v1512_v1, %v1330_v63 }
  0x5b   :  { %853 = vmatpush.bf16.msrb.mxu1 %v1363_v13  ;;  %v1258_v13 = vld [vmem:[#allocation11] sm:$0xf] }
  0x5d   :  { %568 = vmatpush.bf16.msra.mxu2 %v1241_v14  ;;  %582 = vmatpush.bf16.msra.mxu3 %v1245_v15  ;;  %v1303_v14 = vor.u32 %v1503_v11, %v1300_v12  ;;  %v1519_v15 = vld [vmem:[#allocation11 + $0xd4] sm:$0xf] }
  0x5e   :  { %v1367_v17 = vor.u32 %v1519_v15, %v1364_v16  ;;  %v1322_v15 = vld [vmem:[#allocation11 + $0x80] sm:$0xf] }
  0x61   :  { %569 = vmatpush.bf16.msra.mxu2 %v1233_v22  ;;  %583 = vmatpush.bf16.msra.mxu3 %v1237_v23  ;;  %v1518_v22 = vld [vmem:[#allocation11 + $0xc4] sm:$0xf0]  ;;  %v1501_v23 = vld [vmem:[#allocation11 + $0x44] sm:$0xf] }
  0xb7   :  { %v222_v26 = vpop.f32.mrf.mxu2  ;;  %v236_v27 = vpop.f32.mrf.mxu3 }
  0xb8   :  { %v223_v28 = vadd.f32 %v222_v26, %v160_v24  ;;  %v237_v29 = vadd.f32 %v236_v27, %v161_v25  ;;  %v1517_v27 = vld [vmem:[#allocation11 + $0xc4] sm:$0xf] }
  0xba   :  { %v241_v30 = vmax.f32 %v223_v28, 0.0  ;;  %v242_v31 = vmax.f32 %v237_v29, 0.0  ;;  %v1356_v28 = vld [vmem:[#allocation11 + $0xc8] sm:$0xf0]  ;;  %v279_v29 = vld [vmem:[%s1894_s4] sm:$0x3] }
  0xbc   :  { %v245_v36 = vpack.c.bf16 %v242_v31, %v241_v30  ;;  %v1359_v30 = vor.u32 %v1517_v27, %v1356_v28  ;;  %v1282_v31 = vld [vmem:[#allocation11 + $0x30] sm:$0xf] }
  0xbe   :  { %v290_v40 = vunpack.c.l.b16 %v245_v36  ;;  %v291_v41 = vunpack.c.h.b16 %v245_v36  ;;  %v1499_v36 = vld [vmem:[#allocation11 + $0x34] sm:$0xf] }
  0xbf   :  { %v224_v32 = vpop.f32.mrf.mxu2  ;;  %v238_v33 = vpop.f32.mrf.mxu3 }
  0xc0   :  { %v225_v34 = vadd.f32 %v224_v32, %v160_v24  ;;  %v239_v35 = vadd.f32 %v238_v33, %v161_v25  ;;  %v1292_v24 = vld [vmem:[#allocation11 + $0x48] sm:$0xf0]  ;;  %v1355_v25 = vor.u32 %v1518_v22, %v1354_v20  ;;  %v1500_v32 = vld [vmem:[#allocation11 + $0x34] sm:$0xf0]  ;;  %v1346_v33 = vld [vmem:[#allocation11 + $0xb0] sm:$0xf] }
  0xc1   :  { %v1295_v26 = vor.u32 %v1501_v23, %v1292_v24  ;;  %v1263_v23 = vor.u32 %v1493_v18, %v1260_v19  ;;  %v1509_v24 = vld [vmem:[#allocation11 + $0x84] sm:$0xf] }
  0xc2   :  { %v243_v37 = vmax.f32 %v225_v34, 0.0  ;;  %v244_v38 = vmax.f32 %v239_v35, 0.0  ;;  %854 = vmatpush.bf16.msrb.mxu1 %v1355_v25  ;;  %v1283_v34 = vor.u32 %v1500_v32, %v1282_v31  ;;  %v1516_v35 = vld [vmem:[#allocation11 + $0xb4] sm:$0xf0]  ;;  %v1324_v25 = vld [vmem:[#allocation11 + $0x88] sm:$0xf0] }
  0xc3   :  { %v1327_v27 = vor.u32 %v1509_v24, %v1324_v25  ;;  %v1532_v31 = vld [vmem:[#allocation13 + $0x38] sm:$0xff] }
  0xc4   :  { %v246_v39 = vpack.c.bf16 %v244_v38, %v243_v37  ;;  %v1284_v37 = vld [vmem:[#allocation11 + $0x38] sm:$0xf0]  ;;  %v280_v38 = vunpack.c.l.bf16 %v279_v29 }
  0xc5   :  { %v1540_v32 = vld [vmem:[#allocation13 + $0x78] sm:$0xff] }
  0xc6   :  { %v292_v42 = vunpack.c.l.b16 %v246_v39  ;;  %v293_v43 = vunpack.c.h.b16 %v246_v39  ;;  %v1347_v39 = vor.u32 %v1516_v35, %v1346_v33  ;;  %v1874_v54 = vperm.slane %v280_v38, 2 }
  0xc8   :  { %v294_v44 = vpack.c.b16 %v292_v42, %v290_v40  ;;  %v295_v45 = vpack.c.b16 %v293_v43, %v291_v41  ;;  %v1287_v40 = vor.u32 %v1499_v36, %v1284_v37  ;;  %v1515_v41 = vld [vmem:[#allocation11 + $0xb4] sm:$0xf]  ;;  %v1348_v42 = vld [vmem:[#allocation11 + $0xb8] sm:$0xf0]  ;;  %855 = vmatpush.bf16.msrb.mxu1 %v1347_v39  ;;  %v287_v4 = vperm.slane %v1874_v54, 0 }
  0xc9   :  { %v1531_v37 = vld [vmem:[#allocation13 + $0x30] sm:$0xff] }
  0xca   :  { %466 = vmatmul.bf16.vlgmr.msrb.gmra.mxu2 %v294_v44  ;;  %480 = vmatmul.bf16.vlgmr.msrb.gmra.mxu3 %v295_v45 }
  0xcb   :  { %494 = vmatmul.bf16.vlgmr.msra.gmra.mxu0 %v294_v44  ;;  %508 = vmatmul.bf16.vlgmr.msra.gmra.mxu1 %v295_v45  ;;  %v1351_v45 = vor.u32 %v1515_v41, %v1348_v42 }
  0xcc   :  { %864 = vmatpush.bf16.msrb.mxu2 %v1319_v55  ;;  %877 = vmatpush.bf16.msrb.mxu3 %v1383_v58  ;;  %v1876_v55 = vperm.slane %v280_v38, 0  ;;  %v1513_v58 = vld [vmem:[#allocation11 + $0xa4] sm:$0xf]  ;;  %v1539_v38 = vld [vmem:[#allocation13 + $0x70] sm:$0xff] }
  0xcd   :  { %856 = vmatpush.bf16.msrb.mxu1 %v1339_v56 }
  0xd0   :  { %865 = vmatpush.bf16.msrb.mxu2 %v1311_v2  ;;  %878 = vmatpush.bf16.msrb.mxu3 %v1375_v5  ;;  %v1495_v2 = vld [vmem:[#allocation11 + $0x14] sm:$0xf]  ;;  %v286_v5 = vperm.slane %v1876_v55, 0 }
  0xd1   :  { %v1271_v7 = vor.u32 %v1495_v2, %v1268_v3  ;;  %857 = vmatpush.bf16.msrb.mxu1 %v1331_v6  ;;  %v1528_v2 = vld [vmem:[#allocation13 + $0x18] sm:$0xff] }
  0xd4   :  { %866 = vmatpush.bf16.msrb.mxu2 %v1303_v14  ;;  %879 = vmatpush.bf16.msrb.mxu3 %v1367_v17  ;;  %v1494_v14 = vld [vmem:[#allocation11 + $0x4] sm:$0xf0] }
  0xd5   :  { %v1259_v16 = vor.u32 %v1494_v14, %v1258_v13  ;;  %v1510_v17 = vld [vmem:[#allocation11 + $0x84] sm:$0xf0] }
  0xd6   :  { %v1323_v22 = vor.u32 %v1510_v17, %v1322_v15 }
  0xd8   :  { %867 = vmatpush.bf16.msrb.mxu2 %v1295_v26  ;;  %880 = vmatpush.bf16.msrb.mxu3 %v1359_v30 }
  0xd9   :  { %858 = vmatpush.bf16.msrb.mxu1 %v1323_v22 }
  0xda   :  { %1254 = vmatmul.msk.bf16.vlgmr.msra.gmra.mxu2 %vm202_vm1, %v1857_v53  ;;  %1255 = vmatmul.msk.bf16.vlgmr.msra.gmra.mxu3 %vm202_vm1, %v1857_v53  ;;  %v1307_v53 = vor.u32 %v1506_v60, %v1306_v59  ;;  %v1340_v59 = vld [vmem:[#allocation11 + $0xa8] sm:$0xf0] }
  0xdb   :  { %v1343_v60 = vor.u32 %v1513_v58, %v1340_v59  ;;  %v1529_v59 = vld [vmem:[#allocation13 + $0x20] sm:$0xff] }
  0xdc   :  { %839 = vmatpush.bf16.msrb.mxu0 %v1307_v53  ;;  %868 = vmatpush.bf16.msrb.mxu2 %v1287_v40  ;;  %v1266_v53 = vld [vmem:[#allocation11 + $0x10] sm:$0xf] }
  0xdd   :  { %881 = vmatpush.bf16.msrb.mxu3 %v1351_v45  ;;  %v1267_v0 = vor.u32 %v1496_v62, %v1266_v53  ;;  %1038 = vmatpush.bf16.msra.mxu1 %v1540_v32  ;;  %v654_v32 = vld [vmem:[%s1897_s7] sm:$0x3] }
  0xe0   :  { %840 = vmatpush.bf16.msrb.mxu0 %v1299_v9  ;;  %869 = vmatpush.bf16.msrb.mxu2 %v1279_v57  ;;  %v1332_v9 = vld [vmem:[#allocation11 + $0x98] sm:$0xf0] }
  0xe1   :  { %882 = vmatpush.bf16.msrb.mxu3 %v1343_v60  ;;  %v1335_v12 = vor.u32 %v1511_v8, %v1332_v9  ;;  %1039 = vmatpush.bf16.msra.mxu1 %v1539_v38  ;;  %v1537_v60 = vld [vmem:[#allocation13 + $0x60] sm:$0xff]  ;;  %v1527_v9 = vld [vmem:[#allocation13 + $0x10] sm:$0xff] }
  0xe4   :  { %841 = vmatpush.bf16.msrb.mxu0 %v1291_v21  ;;  %870 = vmatpush.bf16.msrb.mxu2 %v1271_v7 }
  0xe5   :  { %883 = vmatpush.bf16.msrb.mxu3 %v1335_v12  ;;  %1040 = vmatpush.bf16.msra.mxu1 %v1538_v47 }
  0xe8   :  { %842 = vmatpush.bf16.msrb.mxu0 %v1283_v34  ;;  %871 = vmatpush.bf16.msrb.mxu2 %v1263_v23 }
  0xe9   :  { %884 = vmatpush.bf16.msrb.mxu3 %v1327_v27  ;;  %1041 = vmatpush.bf16.msra.mxu1 %v1537_v60  ;;  %v1526_v27 = vld [vmem:[#allocation13 + $0x8] sm:$0xff] }
  0xec   :  { %843 = vmatpush.bf16.msrb.mxu0 %v1275_v49 }
  0xf0   :  { %844 = vmatpush.bf16.msrb.mxu0 %v1267_v0 }
  0xf4   :  { %845 = vmatpush.bf16.msrb.mxu0 %v1259_v16 }
  0xf8   :  { %1025 = vmatpush.bf16.msra.mxu0 %v1532_v31  ;;  %v1533_v31 = vld [vmem:[#allocation13 + $0x40] sm:$0xff] }
  0xfc   :  { %1026 = vmatpush.bf16.msra.mxu0 %v1531_v37 }
 0x100   :  { %1027 = vmatpush.bf16.msra.mxu0 %v1530_v46 }
 0x104   :  { %1028 = vmatpush.bf16.msra.mxu0 %v1529_v59 }
 0x108   :  { %1029 = vmatpush.bf16.msra.mxu0 %v1528_v2 }
 0x10c   :  { %1030 = vmatpush.bf16.msra.mxu0 %v1527_v9 }
 0x110   :  { %1031 = vmatpush.bf16.msra.mxu0 %v1526_v27 }
 0x148   :  { %v495_v61 = vpop.f32.mrf.mxu0  ;;  %v509_v26 = vpop.f32.mrf.mxu1 }
 0x149   :  { %v496_v20 = vadd.f32 %v495_v61, %v287_v4 }
 0x14b   :  { %v510_v28 = vadd.f32 %v509_v26, %v496_v20  ;;  %v1536_v26 = vld [vmem:[#allocation13 + $0x58] sm:$0xff] }
 0x14c   :  { %1042 = vmatpush.bf16.msra.mxu1 %v1536_v26 }
 0x14d   :  { %v467_v43 = vpop.f32.mrf.mxu2  ;;  %v1872_v44 = vpop.f32.mrf.mxu3 }
 0x14e   :  { %v468_v21 = vadd.f32 %v467_v43, %v286_v5 }
 0x150   :  { %v482_v29 = vadd.f32 %v1872_v44, %v468_v21  ;;  %v497_v30 = vpop.f32.mrf.mxu0  ;;  %v511_v44 = vpop.f32.mrf.mxu1 }
 0x151   :  { %v498_v39 = vadd.f32 %v497_v30, %v287_v4  ;;  %v1534_v30 = vld [vmem:[#allocation13 + $0x48] sm:$0xff] }
 0x153   :  { %v512_v48 = vadd.f32 %v511_v44, %v498_v39 }
 0x155   :  { %v469_v10 = vpop.f32.mrf.mxu2  ;;  %v483_v11 = vpop.f32.mrf.mxu3 }
 0x156   :  { %v470_v40 = vadd.f32 %v469_v10, %v286_v5 }
 0x158   :  { %v484_v49 = vadd.f32 %v483_v11, %v470_v40 }
 0x15d   :  { %v571_v33 = vpop.f32.mrf.mxu2  ;;  %v585_v34 = vpop.f32.mrf.mxu3 }
 0x15e   :  { %v590_v35 = vmul.f32 %v571_v33, %v482_v29  ;;  %v591_v36 = vmul.f32 %v585_v34, %v510_v28  ;;  %v1535_v28 = vld [vmem:[#allocation13 + $0x50] sm:$0xff]  ;;  %v1525_v29 = vld [vmem:[#allocation13] sm:$0xff]  ;;  %v655_v33 = vunpack.c.l.bf16 %v654_v32 }
 0x15f   :  { %1043 = vmatpush.bf16.msra.mxu1 %v1535_v28  ;;  %1032 = vmatpush.bf16.msra.mxu0 %v1525_v29 }
 0x160   :  { %v594_v41 = vrot.slane %v590_v35, 4  ;;  %v600_v42 = vrot.slane %v591_v36, 4  ;;  %v657_v34 = vperm.slane %v655_v33, 0  ;;  %v658_v38 = vperm.slane %v655_v33, 2 }
 0x162   :  { %v595_v43 = vadd.f32 %v594_v41, %v590_v35  ;;  %v601_v45 = vadd.f32 %v600_v42, %v591_v36  ;;  %v661_v35 = vperm.slane %v657_v34, 0  ;;  %v662_v41 = vperm.slane %v658_v38, 0 }
 0x163   :  { %1044 = vmatpush.bf16.msra.mxu1 %v1534_v30 }
 0x164   :  { %v596_v50 = vrot.slane %v595_v43, 2  ;;  %v602_v51 = vrot.slane %v601_v45, 2 }
 0x165   :  { %v573_v52 = vpop.f32.mrf.mxu2  ;;  %v587_v54 = vpop.f32.mrf.mxu3 }
 0x166   :  { %v597_v55 = vadd.f32 %v596_v50, %v595_v43  ;;  %v603_v56 = vadd.f32 %v602_v51, %v601_v45  ;;  %v592_v57 = vmul.f32 %v573_v52, %v484_v49  ;;  %v593_v58 = vmul.f32 %v587_v54, %v512_v48 }
 0x167   :  { %1045 = vmatpush.bf16.msra.mxu1 %v1533_v31 }
 0x168   :  { %v606_v61 = vrot.slane %v592_v57, 4  ;;  %v612_v53 = vrot.slane %v593_v58, 4  ;;  %v598_v62 = vrot.slane %v597_v55, 1  ;;  %v604_v63 = vrot.slane %v603_v56, 1 }
 0x16a   :  { %v607_v0 = vadd.f32 %v606_v61, %v592_v57  ;;  %v613_v1 = vadd.f32 %v612_v53, %v593_v58  ;;  %v599_v5 = vadd.f32 %v598_v62, %v597_v55  ;;  %v605_v6 = vadd.f32 %v604_v63, %v603_v56  ;;  %v926_v55 = vld [vmem:[%s1899_s9] sm:$0x1] }
 0x16b   :  { %v927_v56 = vunpack.c.l.bf16 %v926_v55 }
 0x16c   :  { %v608_v3 = vrot.slane %v607_v0, 2  ;;  %v614_v4 = vrot.slane %v613_v1, 2  ;;  %v618_v12 = vpack.c.bf16 %v599_v5, %v599_v5  ;;  %v619_v13 = vpack.c.bf16 %v605_v6, %v605_v6 }
 0x16d   :  { %v928_v58 = vperm.slane %v927_v56, 0 }
 0x16e   :  { %v609_v7 = vadd.f32 %v608_v3, %v607_v0  ;;  %v615_v8 = vadd.f32 %v614_v4, %v613_v1  ;;  %v667_v18 = vunpack.c.l.b16 %v618_v12  ;;  %v668_v19 = vunpack.c.l.b16 %v619_v13 }
 0x170   :  { %v610_v10 = vrot.slane %v609_v7, 1  ;;  %v616_v11 = vrot.slane %v615_v8, 1 }
 0x172   :  { %v611_v14 = vadd.f32 %v610_v10, %v609_v7  ;;  %v617_v15 = vadd.f32 %v616_v11, %v615_v8 }
 0x174   :  { %v620_v16 = vpack.c.bf16 %v611_v14, %v611_v14  ;;  %v621_v17 = vpack.c.bf16 %v617_v15, %v617_v15 }
 0x176   :  { %v669_v20 = vunpack.c.l.b16 %v620_v16  ;;  %v670_v21 = vunpack.c.l.b16 %v621_v17 }
 0x178   :  { %v672_v22 = vsel %vm671_vm2, %v669_v20, %v667_v18  ;;  %v673_v23 = vsel %vm671_vm2, %v670_v21, %v668_v19 }
 0x179   :  { %v674_v24 = vpack.c.b16 %v672_v22, %v672_v22  ;;  %v675_v25 = vpack.c.b16 %v673_v23, %v673_v23 }
 0x17b   :  { %846 = vmatmul.bf16.vlgmr.msrb.gmra.mxu0 %v674_v24  ;;  %859 = vmatmul.bf16.vlgmr.msrb.gmra.mxu1 %v675_v25 }
 0x17c   :  { %872 = vmatmul.bf16.vlgmr.msrb.gmra.mxu2 %v674_v24  ;;  %885 = vmatmul.bf16.vlgmr.msrb.gmra.mxu3 %v675_v25 }
 0x1f8   :  { %v847_v36 = vpop.f32.mrf.mxu0  ;;  %v860_v37 = vpop.f32.mrf.mxu1 }
 0x1f9   :  { %v848_v39 = vadd.f32 %v847_v36, %v661_v35 }
 0x1fb   :  { %v861_v40 = vadd.f32 %v860_v37, %v848_v39 }
 0x1fd   :  { %v890_v42 = vmax.f32 %v861_v40, 0.0 }
 0x1ff   :  { %v892_v43 = vpack.c.bf16 %v890_v42, %v890_v42  ;;  %v873_v45 = vpop.f32.mrf.mxu2  ;;  %v886_v46 = vpop.f32.mrf.mxu3 }
 0x200   :  { %v874_v44 = vadd.f32 %v873_v45, %v662_v41  ;;  %v849_v47 = vpop.f32.mrf.mxu0  ;;  %v862_v48 = vpop.f32.mrf.mxu1 }
 0x201   :  { %1033 = vmatmul.bf16.vlgmr.msra.gmra.mxu0 %v892_v43 }
 0x202   :  { %v887_v49 = vadd.f32 %v886_v46, %v874_v44 }
 0x204   :  { %v891_v50 = vmax.f32 %v887_v49, 0.0 }
 0x206   :  { %v893_v51 = vpack.c.bf16 %v891_v50, %v891_v50 }
 0x207   :  { %v875_v52 = vpop.f32.mrf.mxu2  ;;  %v888_v54 = vpop.f32.mrf.mxu3 }
 0x208   :  { %1046 = vmatmul.bf16.vlgmr.msra.gmra.mxu1 %v893_v51 }
 0x27e   :  { %v1034_v57 = vpop.f32.mrf.mxu0 }
 0x27f   :  { %v1035_v59 = vadd.f32 %v1034_v57, %v928_v58 }
 0x285   :  { %v1047_v60 = vpop.f32.mrf.mxu1 }
 0x286   :  { %v1048_v61 = vadd.f32 %v1047_v60, %v1035_v59  ;;  %v1036_v53 = vpop.f32.mrf.mxu0 }
 0x288   :  { %1051 = vst [vmem:[#allocation14] sm:$0x3] %v1048_v61 }
 0x289   :  { %1062 = dma.vmem_to_hbm [thread:$0]  %s1058_s28, 32, %s1060_s11, [#allocation4]  }
 0x28d   :  { %v1049_v62 = vpop.f32.mrf.mxu1 }
 0x28e   :  { %1753 = dma.done.wait [#allocation4], 32  }
 0x28f   :  { %1754 = vsyncadd [#allocation4], 4294967264 }
 0x290   :  { %1067 = vsyncpa [#allocation3], 1 }
 0x291   :  { %1068 = vsyncpa [#allocation6], 1 }
 0x292   :  { %1069 = vsyncpa [#allocation9], 1 }
 0x293   :  { %1070 = vsyncpa [#allocation12], 1 }
 0x294   :  { %1071 = vsyncpa [#allocation4], 1 }

</bundles_post_ra>
